<compile_context>
chip_gen: v5e
topology: v5e:2x2
jax: 0.10.0
libtpu: 0.0.40
codegen_flags: <defaults>
</compile_context>

<pallas_src>
import functools
import math

import jax
import jax.numpy as jnp
from jax.experimental import pallas as pl
from jax.experimental.pallas import tpu as pltpu

LN_EPS = 1e-5      # nn.LayerNorm default
_LANE = 128


def _round_up(v, m):
    return (v + m - 1) // m * m


def _cdiv(a, b):
    return -(-a // b)


def _default_block_n():
    # Bigger row tiles amortize per-grid-step overhead on 128 MiB-VMEM parts
    # (v5e/v6e); stay at 512 on v7x (64 MiB) / unknown hardware.
    try:
        vmem = pltpu.get_tpu_info().vmem_capacity_bytes
        return 1024 if vmem >= (100 << 20) else 512
    except Exception:
        return 512


def _pwff_kernel(x_ref, w1_ref, b1_ref, w2_ref, b2_ref, gamma_ref, beta_ref,
                 o_ref, acc_ref, *, d_in, d_pad, norm):
    # x_ref : (tn, d_pad)   w1_ref : (d_pad, th)   w2_ref : (th, d_pad)
    # b1 : (1, th) f32      b2/gamma/beta : (1, d_pad) f32
    # acc_ref : (tn, d_pad) f32 scratch, accumulated over the hidden-tile axis.
    hk = pl.program_id(1)

    @pl.when(hk == 0)
    def _init():
        acc_ref[...] = jnp.zeros_like(acc_ref)

    x = x_ref[...]                                            # native dtype

    # w_1 slice (1x1 conv == linear) + bias + ReLU for this hidden tile.
    # MXU takes native-dtype operands, accumulates in f32.
    h = jnp.dot(x, w1_ref[...], preferred_element_type=jnp.float32)
    h = jnp.maximum(h + b1_ref[...], 0.0)                     # (tn, th) f32

    # Partial w_2 product, accumulated in f32 over hidden tiles.
    acc_ref[...] += jnp.dot(h.astype(w2_ref.dtype), w2_ref[...],
                            preferred_element_type=jnp.float32)

    @pl.when(hk == pl.num_programs(1) - 1)
    def _epilogue():
        # Dropout is identity at inference.
        # TODO(synk): training-mode dropout would need pltpu.prng_* in-kernel.
        out = acc_ref[...] + b2_ref[...] + x.astype(jnp.float32)
        # Padded feature lanes of `out` are exactly zero (zero-padded W2
        # columns, b2, and x), so row sums over all lanes equal sums over the
        # real d_in lanes.
        if norm:
            inv_d = jnp.float32(1.0 / d_in)
            mean = jnp.sum(out, axis=-1, keepdims=True) * inv_d
            ctr = out - mean
            sq_sum = jnp.sum(ctr * ctr, axis=-1, keepdims=True)
            if d_pad != d_in:
                # Padded lanes of `ctr` are exactly -mean; subtract their
                # contribution analytically instead of an iota/select mask.
                sq_sum = sq_sum - jnp.float32(d_pad - d_in) * mean * mean
            var = sq_sum * inv_d
            inv = jax.lax.rsqrt(var + LN_EPS)
            # gamma/beta are zero on padded lanes -> padded output lanes are 0.
            out = ctr * inv * gamma_ref[...] + beta_ref[...]
        o_ref[...] = out.astype(o_ref.dtype)


def positionwise_feed_forward(x, w1, b1, w2, b2, gamma, beta, *,
                              norm=True, block_n=None, block_h=1024):
    """x: (..., d_in).  w1: (d_in, d_hid) (= conv w_1.weight[:, :, 0].T),
    w2: (d_hid, d_in), b1: (d_hid,), b2/gamma/beta: (d_in,)."""
    orig_shape = x.shape
    d_in = orig_shape[-1]
    d_hid = w1.shape[1]
    N = math.prod(orig_shape[:-1])
    if N == 0:
        return x  # empty input: nothing to compute
    if block_n is None:
        block_n = _default_block_n()

    f32 = jnp.float32
    d_pad = _round_up(d_in, _LANE)

    # ---- hidden-dim tiling: balanced tiles of at most ~block_h columns -----
    h_pad0 = _round_up(d_hid, _LANE)
    h_blocks = max(1, _cdiv(h_pad0, block_h))
    th = _round_up(_cdiv(h_pad0, h_blocks), _LANE)
    h_pad = th * h_blocks

    # ---- row tiling: balanced tiles; >=2 steps for v7x's two TensorCores ---
    sub = 8 if x.dtype.itemsize >= 4 else 16   # sub-32-bit packs rows in pairs
    row_blocks = _cdiv(N, block_n)
    if N > 1024:
        row_blocks = max(row_blocks, 2)
    tn = _round_up(_cdiv(N, row_blocks), sub)
    n_pad = _round_up(N, tn)
    grid = (n_pad // tn, h_blocks)

    # ---- pad params (skipped entirely when already lane-aligned) -----------
    # TODO(synk): in a real model, pre-pad / pre-cast the parameters once
    # outside the per-call path instead of re-padding on every forward.
    def pad2(a, r, c):
        pr, pc = r - a.shape[0], c - a.shape[1]
        return a if (pr == 0 and pc == 0) else jnp.pad(a, ((0, pr), (0, pc)))

    def pad_row(v, c):
        v = v.astype(f32)
        p = c - v.shape[0]
        v = v if p == 0 else jnp.pad(v, (0, p))
        return v.reshape(1, c)

    w1p = pad2(w1, d_pad, h_pad)
    w2p = pad2(w2, h_pad, d_pad)
    b1p = pad_row(b1, h_pad)
    b2p = pad_row(b2, d_pad)
    gp = pad_row(gamma, d_pad)
    bp = pad_row(beta, d_pad)

    x2 = x.reshape(N, d_in)
    if n_pad != N or d_pad != d_in:
        x2 = jnp.pad(x2, ((0, n_pad - N), (0, d_pad - d_in)))

    # ---- VMEM budget: working set + 50% headroom, clamped to 16..64 MiB ----
    x_bytes = x.dtype.itemsize
    w_bytes = w1.dtype.itemsize
    w_nbuf = 1 if h_blocks == 1 else 2           # weight tiles re-DMA only if tiled
    est = (
        4 * tn * d_pad * x_bytes                 # x + out, double-buffered
        + w_nbuf * 2 * d_pad * th * w_bytes      # w1 + w2 tiles
        + w_nbuf * th * 4 + 3 * d_pad * 4        # b1, b2, gamma, beta
        + tn * d_pad * 4                         # f32 accumulator scratch
        + tn * th * (4 + w_bytes)                # transient h (f32 + cast copy)
    )
    vmem_limit = max(16 << 20, min(int(est * 1.5) + (2 << 20), 64 << 20))

    def spec(shape, index_map, nbuf=2):
        # Single-buffer grid-invariant operands: no re-DMA, half the VMEM.
        if nbuf == 1:
            return pl.BlockSpec(shape, index_map, pipeline_mode=pl.Buffered(1))
        return pl.BlockSpec(shape, index_map)

    row_spec = pl.BlockSpec((tn, d_pad), lambda i, hk: (i, 0))

    kernel = functools.partial(_pwff_kernel, d_in=d_in, d_pad=d_pad, norm=norm)

    out = pl.pallas_call(
        kernel,
        out_shape=jax.ShapeDtypeStruct((n_pad, d_pad), x.dtype),
        grid_spec=pltpu.PrefetchScalarGridSpec(
            num_scalar_prefetch=0,
            grid=grid,
            in_specs=[
                row_spec,                                            # x
                spec((d_pad, th), lambda i, hk: (0, hk), w_nbuf),    # w1
                spec((1, th),     lambda i, hk: (0, hk), w_nbuf),    # b1
                spec((th, d_pad), lambda i, hk: (hk, 0), w_nbuf),    # w2
                spec((1, d_pad),  lambda i, hk: (0, 0), 1),          # b2
                spec((1, d_pad),  lambda i, hk: (0, 0), 1),          # gamma
                spec((1, d_pad),  lambda i, hk: (0, 0), 1),          # beta
            ],
            out_specs=row_spec,
            scratch_shapes=[pltpu.VMEM((tn, d_pad), jnp.float32)],
        ),
        compiler_params=pltpu.CompilerParams(
            dimension_semantics=("parallel", "arbitrary"),
            vmem_limit_bytes=vmem_limit),
    )(x2, w1p, b1p, w2p, b2p, gp, bp)

    return out[:N, :d_in].reshape(orig_shape)


def _reference(x, w1, b1, w2, b2, gamma, beta, norm=True):
    h = jnp.maximum(x @ w1 + b1, 0.0)
    out = h @ w2 + b2 + x
    if norm:
        mean = jnp.mean(out, axis=-1, keepdims=True)
        var = jnp.mean((out - mean) ** 2, axis=-1, keepdims=True)
        out = (out - mean) * jax.lax.rsqrt(var + LN_EPS) * gamma + beta
    return out


def _make_params(key, d_in, d_hid):
    k1, kb1, k2, kb2 = jax.random.split(key, 4)
    w1 = jax.random.normal(k1, (d_in, d_hid), jnp.float32) * 0.1
    b1 = jax.random.normal(kb1, (d_hid,), jnp.float32) * 0.05
    w2 = jax.random.normal(k2, (d_hid, d_in), jnp.float32) * 0.1
    b2 = jax.random.normal(kb2, (d_in,), jnp.float32) * 0.05
    gamma = jnp.ones((d_in,), jnp.float32)
    beta = jnp.zeros((d_in,), jnp.float32)
    return w1, b1, w2, b2, gamma, beta


if __name__ == "__main__":
    key = jax.random.PRNGKey(0)
    kx1, kp1, kx2, kp2 = jax.random.split(key, 4)

    # --- test 1: module-like small shape (single grid step) -----------------
    B, L, d_in, d_hid = 2, 8, 32, 64
    x = jax.random.normal(kx1, (B, L, d_in), jnp.float32)
    w1, b1, w2, b2, gamma, beta = _make_params(kp1, d_in, d_hid)

    out = positionwise_feed_forward(x, w1, b1, w2, b2, gamma, beta, norm=True)
    out = jax.block_until_ready(out)
    ref = _reference(x, w1, b1, w2, b2, gamma, beta, norm=True)
    assert out.shape == (B, L, d_in)
    assert jnp.allclose(out, ref, atol=1e-4, rtol=1e-4), "mismatch (norm=True)"

    out_nn = positionwise_feed_forward(x, w1, b1, w2, b2, gamma, beta, norm=False)
    out_nn = jax.block_until_ready(out_nn)
    ref_nn = _reference(x, w1, b1, w2, b2, gamma, beta, norm=False)
    assert jnp.allclose(out_nn, ref_nn, atol=1e-4, rtol=1e-4), "mismatch (norm=False)"

    # --- test 2: exercise multi-row-block grid + tiled-hidden accumulation --
    B2, L2, di2, dh2 = 2, 40, 48, 256
    x2 = jax.random.normal(kx2, (B2, L2, di2), jnp.float32)
    p2 = _make_params(kp2, di2, dh2)
    out2 = positionwise_feed_forward(x2, *p2, norm=True, block_n=32, block_h=128)
    out2 = jax.block_until_ready(out2)
    ref2 = _reference(x2, *p2, norm=True)
    assert out2.shape == (B2, L2, di2)
    assert jnp.allclose(out2, ref2, atol=2e-4, rtol=2e-4), "mismatch (tiled path)"

    print("KERNEL_OK")
</pallas_src>

<mosaic_0001>
module attributes {stable_mosaic.version = 11 : i64} {
  func.func @_pwff_kernel(%arg0: i32, %arg1: i32, %arg2: memref<16x128xf32, #tpu.memory_space<vmem>>, %arg3: memref<128x128xf32, #tpu.memory_space<vmem>>, %arg4: memref<1x128xf32, #tpu.memory_space<vmem>>, %arg5: memref<128x128xf32, #tpu.memory_space<vmem>>, %arg6: memref<1x128xf32, #tpu.memory_space<vmem>>, %arg7: memref<1x128xf32, #tpu.memory_space<vmem>>, %arg8: memref<1x128xf32, #tpu.memory_space<vmem>>, %arg9: memref<16x128xf32, #tpu.memory_space<vmem>>, %arg10: memref<16x128xf32, #tpu.memory_space<vmem>>) attributes {dimension_semantics = [#tpu.dimension_semantics<parallel>, #tpu.dimension_semantics<arbitrary>], iteration_bounds = array<i64: 1, 1>, scalar_prefetch = 0 : i64, scratch_operands = 1 : i64, tpu.core_type = #tpu.core_type<tc>, window_params = [{transform_indices = @transform_0, window_bounds = array<i64: 16, 128>}, {pipeline_mode = #tpu.pipeline_mode<synchronous>, transform_indices = @transform_1, window_bounds = array<i64: 128, 128>}, {pipeline_mode = #tpu.pipeline_mode<synchronous>, transform_indices = @transform_2, window_bounds = array<i64: 1, 128>}, {pipeline_mode = #tpu.pipeline_mode<synchronous>, transform_indices = @transform_3, window_bounds = array<i64: 128, 128>}, {pipeline_mode = #tpu.pipeline_mode<synchronous>, transform_indices = @transform_4, window_bounds = array<i64: 1, 128>}, {pipeline_mode = #tpu.pipeline_mode<synchronous>, transform_indices = @transform_5, window_bounds = array<i64: 1, 128>}, {pipeline_mode = #tpu.pipeline_mode<synchronous>, transform_indices = @transform_6, window_bounds = array<i64: 1, 128>}, {transform_indices = @transform_7, window_bounds = array<i64: 16, 128>}]} {
    %c0_i32 = arith.constant 0 : i32
    %0 = arith.cmpi eq, %arg1, %c0_i32 : i32
    %1 = arith.extui %0 : i1 to i32
    %c0_i32_0 = arith.constant 0 : i32
    %2 = arith.cmpi ne, %1, %c0_i32_0 : i32
    scf.if %2 {
      %cst_16 = arith.constant 0.000000e+00 : f32
      %19 = vector.broadcast %cst_16 : f32 to vector<16x128xf32>
      %c0_17 = arith.constant 0 : index
      %c0_18 = arith.constant 0 : index
      %20 = vector.load %arg10[%c0_17, %c0_18] : memref<16x128xf32, #tpu.memory_space<vmem>>, vector<16x128xf32>
      tpu.vector_store %arg10[%c0_17, %c0_18], %19 {strides = array<i32>} : memref<16x128xf32, #tpu.memory_space<vmem>>, vector<16x128xf32>,
    } else {
    }
    %c0 = arith.constant 0 : index
    %c0_1 = arith.constant 0 : index
    %3 = vector.load %arg2[%c0, %c0_1] : memref<16x128xf32, #tpu.memory_space<vmem>>, vector<16x128xf32>
    %c0_2 = arith.constant 0 : index
    %c0_3 = arith.constant 0 : index
    %4 = vector.load %arg3[%c0_2, %c0_3] : memref<128x128xf32, #tpu.memory_space<vmem>>, vector<128x128xf32>
    %cst = arith.constant dense<0.000000e+00> : vector<16x128xf32>
    %5 = tpu.matmul %3, %4, %cst {dimension_numbers = #tpu.dot_dimension_numbers<[1], [0], [0], [1], [0, 0, 1, 1], [], []>} : vector<16x128xf32>, vector<128x128xf32>, vector<16x128xf32> -> vector<16x128xf32>
    %c0_4 = arith.constant 0 : index
    %c0_5 = arith.constant 0 : index
    %6 = vector.load %arg4[%c0_4, %c0_5] : memref<1x128xf32, #tpu.memory_space<vmem>>, vector<1x128xf32>
    %7 = vector.broadcast %6 : vector<1x128xf32> to vector<16x128xf32>
    %8 = arith.addf %5, %7 : vector<16x128xf32>
    %cst_6 = arith.constant 0.000000e+00 : f32
    %9 = vector.broadcast %cst_6 : f32 to vector<16x128xf32>
    %10 = arith.maximumf %8, %9 : vector<16x128xf32>
    %c0_7 = arith.constant 0 : index
    %c0_8 = arith.constant 0 : index
    %11 = vector.load %arg10[%c0_7, %c0_8] : memref<16x128xf32, #tpu.memory_space<vmem>>, vector<16x128xf32>
    %c0_9 = arith.constant 0 : index
    %c0_10 = arith.constant 0 : index
    %12 = vector.load %arg5[%c0_9, %c0_10] : memref<128x128xf32, #tpu.memory_space<vmem>>, vector<128x128xf32>
    %cst_11 = arith.constant dense<0.000000e+00> : vector<16x128xf32>
    %13 = tpu.matmul %10, %12, %cst_11 {dimension_numbers = #tpu.dot_dimension_numbers<[1], [0], [0], [1], [0, 0, 1, 1], [], []>} : vector<16x128xf32>, vector<128x128xf32>, vector<16x128xf32> -> vector<16x128xf32>
    %14 = arith.addf %11, %13 : vector<16x128xf32>
    %c0_12 = arith.constant 0 : index
    %c0_13 = arith.constant 0 : index
    %15 = vector.load %arg10[%c0_12, %c0_13] : memref<16x128xf32, #tpu.memory_space<vmem>>, vector<16x128xf32>
    tpu.vector_store %arg10[%c0_12, %c0_13], %14 {strides = array<i32>} : memref<16x128xf32, #tpu.memory_space<vmem>>, vector<16x128xf32>,
    %c0_i32_14 = arith.constant 0 : i32
    %16 = arith.cmpi eq, %arg1, %c0_i32_14 : i32
    %17 = arith.extui %16 : i1 to i32
    %c0_i32_15 = arith.constant 0 : i32
    %18 = arith.cmpi ne, %17, %c0_i32_15 : i32
    scf.if %18 {
      %c0_16 = arith.constant 0 : index
      %c0_17 = arith.constant 0 : index
      %19 = vector.load %arg10[%c0_16, %c0_17] : memref<16x128xf32, #tpu.memory_space<vmem>>, vector<16x128xf32>
      %c0_18 = arith.constant 0 : index
      %c0_19 = arith.constant 0 : index
      %20 = vector.load %arg6[%c0_18, %c0_19] : memref<1x128xf32, #tpu.memory_space<vmem>>, vector<1x128xf32>
      %21 = vector.broadcast %20 : vector<1x128xf32> to vector<16x128xf32>
      %22 = arith.addf %19, %21 : vector<16x128xf32>
      %23 = arith.addf %22, %3 : vector<16x128xf32>
      %cst_20 = arith.constant dense<0.000000e+00> : vector<16xf32>
      %24 = vector.multi_reduction <add>, %23, %cst_20 [1] : vector<16x128xf32> to vector<16xf32>
      %25 = vector.shape_cast %24 : vector<16xf32> to vector<16x1xf32>
      %cst_21 = arith.constant 3.125000e-02 : f32
      %26 = vector.broadcast %cst_21 : f32 to vector<16x1xf32>
      %27 = arith.mulf %25, %26 : vector<16x1xf32>
      %28 = vector.broadcast %27 : vector<16x1xf32> to vector<16x128xf32>
      %29 = arith.subf %23, %28 : vector<16x128xf32>
      %30 = arith.mulf %29, %29 : vector<16x128xf32>
      %cst_22 = arith.constant dense<0.000000e+00> : vector<16xf32>
      %31 = vector.multi_reduction <add>, %30, %cst_22 [1] : vector<16x128xf32> to vector<16xf32>
      %32 = vector.shape_cast %31 : vector<16xf32> to vector<16x1xf32>
      %cst_23 = arith.constant 9.600000e+01 : f32
      %33 = vector.broadcast %cst_23 : f32 to vector<16x1xf32>
      %34 = arith.mulf %33, %27 : vector<16x1xf32>
      %35 = arith.mulf %34, %27 : vector<16x1xf32>
      %36 = arith.subf %32, %35 : vector<16x1xf32>
      %cst_24 = arith.constant 3.125000e-02 : f32
      %37 = vector.broadcast %cst_24 : f32 to vector<16x1xf32>
      %38 = arith.mulf %36, %37 : vector<16x1xf32>
      %cst_25 = arith.constant 9.99999974E-6 : f32
      %39 = vector.broadcast %cst_25 : f32 to vector<16x1xf32>
      %40 = arith.addf %38, %39 : vector<16x1xf32>
      %41 = math.rsqrt %40 : vector<16x1xf32>
      %42 = vector.broadcast %41 : vector<16x1xf32> to vector<16x128xf32>
      %43 = arith.mulf %29, %42 : vector<16x128xf32>
      %c0_26 = arith.constant 0 : index
      %c0_27 = arith.constant 0 : index
      %44 = vector.load %arg7[%c0_26, %c0_27] : memref<1x128xf32, #tpu.memory_space<vmem>>, vector<1x128xf32>
      %45 = vector.broadcast %44 : vector<1x128xf32> to vector<16x128xf32>
      %46 = arith.mulf %43, %45 : vector<16x128xf32>
      %c0_28 = arith.constant 0 : index
      %c0_29 = arith.constant 0 : index
      %47 = vector.load %arg8[%c0_28, %c0_29] : memref<1x128xf32, #tpu.memory_space<vmem>>, vector<1x128xf32>
      %48 = vector.broadcast %47 : vector<1x128xf32> to vector<16x128xf32>
      %49 = arith.addf %46, %48 : vector<16x128xf32>
      %c0_30 = arith.constant 0 : index
      %c0_31 = arith.constant 0 : index
      %50 = vector.load %arg9[%c0_30, %c0_31] : memref<16x128xf32, #tpu.memory_space<vmem>>, vector<16x128xf32>
      tpu.vector_store %arg9[%c0_30, %c0_31], %49 {strides = array<i32>} : memref<16x128xf32, #tpu.memory_space<vmem>>, vector<16x128xf32>,
    } else {
    }
    return
  }
  func.func @transform_0(%arg0: i32, %arg1: i32) -> (i32, i32) {
    %c0_i32 = arith.constant 0 : i32
    %c0_i32_0 = arith.constant 0 : i32
    return %arg0, %c0_i32 : i32, i32
  }
  func.func @transform_1(%arg0: i32, %arg1: i32) -> (i32, i32) {
    %c0_i32 = arith.constant 0 : i32
    %c0_i32_0 = arith.constant 0 : i32
    return %c0_i32, %arg1 : i32, i32
  }
  func.func @transform_2(%arg0: i32, %arg1: i32) -> (i32, i32) {
    %c0_i32 = arith.constant 0 : i32
    %c0_i32_0 = arith.constant 0 : i32
    return %c0_i32, %arg1 : i32, i32
  }
  func.func @transform_3(%arg0: i32, %arg1: i32) -> (i32, i32) {
    %c0_i32 = arith.constant 0 : i32
    %c0_i32_0 = arith.constant 0 : i32
    return %arg1, %c0_i32 : i32, i32
  }
  func.func @transform_4(%arg0: i32, %arg1: i32) -> (i32, i32) {
    %c0_i32 = arith.constant 0 : i32
    %c0_i32_0 = arith.constant 0 : i32
    %c0_i32_1 = arith.constant 0 : i32
    return %c0_i32, %c0_i32_0 : i32, i32
  }
  func.func @transform_5(%arg0: i32, %arg1: i32) -> (i32, i32) {
    %c0_i32 = arith.constant 0 : i32
    %c0_i32_0 = arith.constant 0 : i32
    %c0_i32_1 = arith.constant 0 : i32
    return %c0_i32, %c0_i32_0 : i32, i32
  }
  func.func @transform_6(%arg0: i32, %arg1: i32) -> (i32, i32) {
    %c0_i32 = arith.constant 0 : i32
    %c0_i32_0 = arith.constant 0 : i32
    %c0_i32_1 = arith.constant 0 : i32
    return %c0_i32, %c0_i32_0 : i32, i32
  }
  func.func @transform_7(%arg0: i32, %arg1: i32) -> (i32, i32) {
    %c0_i32 = arith.constant 0 : i32
    %c0_i32_0 = arith.constant 0 : i32
    return %arg0, %c0_i32 : i32, i32
  }
}

</mosaic_0001>

<bundles_post_ra>
// kernel: tpu_custom_call.1
= control target key start
LH: loop header
LB: loop body
LE: loop exit
PB: predicated region body
PF: predicated region fallthrough
CT: control target
= control target key end

     0   :  { %12 = vsyncpa [#allocation4], 0  ;;  %s495_s0 = inlined_call_operand.hbm [shape: f32[16,128], index: 0, kind: input, shape index: {}]   ;;  %s496_s1 = inlined_call_operand.hbm [shape: f32[128,128], index: 1, kind: input, shape index: {}]   ;;  %s497_s2 = inlined_call_operand.vmem [shape: f32[1,128], index: 2, kind: input, shape index: {}]   ;;  %s498_s3 = inlined_call_operand.hbm [shape: f32[128,128], index: 3, kind: input, shape index: {}]   ;;  %s499_s4 = inlined_call_operand.vmem [shape: f32[1,128], index: 4, kind: input, shape index: {}]   ;;  %s500_s5 = inlined_call_operand.vmem [shape: f32[1,128], index: 5, kind: input, shape index: {}]   ;;  %s501_s6 = inlined_call_operand.vmem [shape: f32[1,128], index: 6, kind: input, shape index: {}]   ;;  %s502_s7 = inlined_call_operand.hbm [shape: f32[16,128], index: 7, kind: output, shape index: {}]  }
   0x1   :  { %13 = vsyncpa [#allocation7], 0 }
   0x2   :  { %14 = vsyncpa [#allocation5], 0  ;;  %s32_s26 = sshll.u32 %s496_s1, 4  ;;  %s413_s27 = smov [#allocation6]   ;;  %s33_s26 = int_to_ptr.hbm [resolvable:$true] %s32_s26 }
   0x3   :  { %s34_s28 = sshll.u32 %s413_s27, 4  ;;  %s19_s8 = sshll.u32 %s495_s0, 4  ;;  %s35_s28 = int_to_ptr.vmem [resolvable:$true] %s34_s28  ;;  %s20_s8 = int_to_ptr.hbm [resolvable:$true] %s19_s8 }
   0x4   :  { %s414_s9 = smov 128   ;;  %s415_s10 = smov 8  }
   0x5   :  { %40 = dma.hbm_to_vmem [thread:$0]  %s33_s26, 2048, %s35_s28, [#allocation7], %s414_s9, %s414_s9, %s415_s10  }
   0x6   :  { %s416_s11 = smov [#allocation3]   ;;  %s47_s1 = sshll.u32 %s498_s3, 4  ;;  %s48_s1 = int_to_ptr.hbm [resolvable:$true] %s47_s1 }
   0x7   :  { %s21_s12 = sshll.u32 %s416_s11, 4  ;;  %s417_s0 = smov [#allocation8]   ;;  %s22_s12 = int_to_ptr.vmem [resolvable:$true] %s21_s12 }
   0x8   :  { %27 = dma.hbm_to_vmem [thread:$0]  %s20_s8, 256, %s22_s12, [#allocation4], %s414_s9, %s414_s9, %s415_s10  }
   0x9   :  { %s49_s15 = sshll.u32 %s417_s0, 4  ;;  %s50_s15 = int_to_ptr.vmem [resolvable:$true] %s49_s15 }
   0xa   :  { %55 = dma.hbm_to_vmem [thread:$0]  %s48_s1, 2048, %s50_s15, [#allocation7], %s414_s9, %s414_s9, %s415_s10  }
   0xb   :  { %407 = dma.done.wait [#allocation4], 256  }
   0xc   :  { %408 = vsyncadd [#allocation4], 4294967040 }
   0xd   :  { %409 = dma.done.wait [#allocation7], 4096  }
   0xe   :  { %410 = vsyncadd [#allocation7], 4294963200  ;;  %v97_v0 = vld [vmem:[#allocation6 + $0x78] sm:$0xff]  ;;  %v96_v1 = vld [vmem:[#allocation6 + $0x70] sm:$0xff]  ;;  %s251_s24 = sshll.u32 %s502_s7, 4  ;;  %s252_s24 = int_to_ptr.hbm [resolvable:$true] %s251_s24 }
   0xf   :  { %102 = vmatpush.msra.mxu0 %v97_v0  ;;  %265 = vmatpush.msra.mxu2 %v97_v0  ;;  %v95_v2 = vld [vmem:[#allocation6 + $0x68] sm:$0xff]  ;;  %v94_v3 = vld [vmem:[#allocation6 + $0x60] sm:$0xff]  ;;  %v93_v4 = vld [vmem:[#allocation6 + $0x58] sm:$0xff] }
  0x10   :  { %v144_v5 = vld [vmem:[#allocation8 + $0x78] sm:$0xff]  ;;  %v143_v6 = vld [vmem:[#allocation8 + $0x70] sm:$0xff]  ;;  %v142_v8 = vld [vmem:[#allocation8 + $0x68] sm:$0xff] }
  0x11   :  { %103 = vmatpush.msra.mxu0 %v96_v1  ;;  %266 = vmatpush.msra.mxu2 %v96_v1  ;;  %v92_v7 = vld [vmem:[#allocation6 + $0x50] sm:$0xff]  ;;  %v91_v9 = vld [vmem:[#allocation6 + $0x48] sm:$0xff]  ;;  %v141_v10 = vld [vmem:[#allocation8 + $0x60] sm:$0xff] }
  0x12   :  { %145 = vmatpush.msra.mxu1 %v144_v5  ;;  %281 = vmatpush.msra.mxu3 %v144_v5  ;;  %v90_v11 = vld [vmem:[#allocation6 + $0x40] sm:$0xff]  ;;  %v140_v12 = vld [vmem:[#allocation8 + $0x58] sm:$0xff]  ;;  %v139_v14 = vld [vmem:[#allocation8 + $0x50] sm:$0xff] }
  0x13   :  { %104 = vmatpush.msra.mxu0 %v95_v2  ;;  %267 = vmatpush.msra.mxu2 %v95_v2  ;;  %v89_v13 = vld [vmem:[#allocation6 + $0x38] sm:$0xff]  ;;  %v88_v15 = vld [vmem:[#allocation6 + $0x30] sm:$0xff]  ;;  %v138_v16 = vld [vmem:[#allocation8 + $0x48] sm:$0xff] }
  0x14   :  { %146 = vmatpush.msra.mxu1 %v143_v6  ;;  %282 = vmatpush.msra.mxu3 %v143_v6  ;;  %v87_v17 = vld [vmem:[#allocation6 + $0x28] sm:$0xff]  ;;  %v137_v18 = vld [vmem:[#allocation8 + $0x40] sm:$0xff]  ;;  %v136_v20 = vld [vmem:[#allocation8 + $0x38] sm:$0xff] }
  0x15   :  { %105 = vmatpush.msra.mxu0 %v94_v3  ;;  %268 = vmatpush.msra.mxu2 %v94_v3  ;;  %v86_v19 = vld [vmem:[#allocation6 + $0x20] sm:$0xff]  ;;  %v85_v21 = vld [vmem:[#allocation6 + $0x18] sm:$0xff]  ;;  %v135_v22 = vld [vmem:[#allocation8 + $0x30] sm:$0xff] }
  0x16   :  { %147 = vmatpush.msra.mxu1 %v142_v8  ;;  %283 = vmatpush.msra.mxu3 %v142_v8  ;;  %v84_v23 = vld [vmem:[#allocation6 + $0x10] sm:$0xff]  ;;  %v134_v24 = vld [vmem:[#allocation8 + $0x28] sm:$0xff]  ;;  %v133_v26 = vld [vmem:[#allocation8 + $0x20] sm:$0xff] }
  0x17   :  { %106 = vmatpush.msra.mxu0 %v93_v4  ;;  %269 = vmatpush.msra.mxu2 %v93_v4  ;;  %v83_v25 = vld [vmem:[#allocation6 + $0x8] sm:$0xff]  ;;  %v82_v27 = vld [vmem:[#allocation6] sm:$0xff]  ;;  %v80_v28 = vld [vmem:[#allocation3] sm:$0xff] }
  0x18   :  { %148 = vmatpush.msra.mxu1 %v141_v10  ;;  %284 = vmatpush.msra.mxu3 %v141_v10  ;;  %v81_v29 = vld [vmem:[#allocation3 + $0x8] sm:$0xff]  ;;  %v131_v31 = vld [vmem:[#allocation8 + $0x10] sm:$0xff]  ;;  %v130_v32 = vld [vmem:[#allocation8 + $0x8] sm:$0xff] }
  0x19   :  { %107 = vmatpush.msra.mxu0 %v92_v7  ;;  %270 = vmatpush.msra.mxu2 %v92_v7  ;;  %v132_v30 = vld [vmem:[#allocation8 + $0x18] sm:$0xff]  ;;  %v129_v33 = vld [vmem:[#allocation8] sm:$0xff]  ;;  %v303_v34 = vld [vmem:[%s497_s2] ss:$0 sm:$0xff] }
  0x1a   :  { %149 = vmatpush.msra.mxu1 %v140_v12  ;;  %285 = vmatpush.msra.mxu3 %v140_v12  ;;  %v304_v41 = vld [vmem:[%s499_s4] ss:$0 sm:$0xff] }
  0x1b   :  { %108 = vmatpush.msra.mxu0 %v91_v9  ;;  %271 = vmatpush.msra.mxu2 %v91_v9  ;;  %v305_v10 = vld [vmem:[%s500_s5] ss:$0 sm:$0xff]  ;;  %s418_s5 = smov [#allocation9]  }
  0x1c   :  { %150 = vmatpush.msra.mxu1 %v139_v14  ;;  %286 = vmatpush.msra.mxu3 %v139_v14  ;;  %v306_v14 = vld [vmem:[%s501_s6] ss:$0 sm:$0xff]  ;;  %s249_s21 = sshll.u32 %s418_s5, 4  ;;  %s250_s21 = int_to_ptr.vmem [resolvable:$true] %s249_s21 }
  0x1d   :  { %109 = vmatpush.msra.mxu0 %v90_v11  ;;  %272 = vmatpush.msra.mxu2 %v90_v11 }
  0x1e   :  { %151 = vmatpush.msra.mxu1 %v138_v16  ;;  %287 = vmatpush.msra.mxu3 %v138_v16 }
  0x1f   :  { %110 = vmatpush.msra.mxu0 %v89_v13  ;;  %273 = vmatpush.msra.mxu2 %v89_v13 }
  0x20   :  { %152 = vmatpush.msra.mxu1 %v137_v18  ;;  %288 = vmatpush.msra.mxu3 %v137_v18 }
  0x21   :  { %111 = vmatpush.msra.mxu0 %v88_v15  ;;  %274 = vmatpush.msra.mxu2 %v88_v15 }
  0x22   :  { %153 = vmatpush.msra.mxu1 %v136_v20  ;;  %289 = vmatpush.msra.mxu3 %v136_v20 }
  0x23   :  { %112 = vmatpush.msra.mxu0 %v87_v17  ;;  %275 = vmatpush.msra.mxu2 %v87_v17 }
  0x24   :  { %154 = vmatpush.msra.mxu1 %v135_v22  ;;  %290 = vmatpush.msra.mxu3 %v135_v22 }
  0x25   :  { %113 = vmatpush.msra.mxu0 %v86_v19  ;;  %276 = vmatpush.msra.mxu2 %v86_v19 }
  0x26   :  { %155 = vmatpush.msra.mxu1 %v134_v24  ;;  %291 = vmatpush.msra.mxu3 %v134_v24 }
  0x27   :  { %114 = vmatpush.msra.mxu0 %v85_v21  ;;  %277 = vmatpush.msra.mxu2 %v85_v21 }
  0x28   :  { %156 = vmatpush.msra.mxu1 %v133_v26  ;;  %292 = vmatpush.msra.mxu3 %v133_v26 }
  0x29   :  { %115 = vmatpush.msra.mxu0 %v84_v23  ;;  %278 = vmatpush.msra.mxu2 %v84_v23 }
  0x2a   :  { %157 = vmatpush.msra.mxu1 %v132_v30  ;;  %293 = vmatpush.msra.mxu3 %v132_v30 }
  0x2b   :  { %116 = vmatpush.msra.mxu0 %v83_v25  ;;  %279 = vmatpush.msra.mxu2 %v83_v25 }
  0x2c   :  { %158 = vmatpush.msra.mxu1 %v131_v31  ;;  %294 = vmatpush.msra.mxu3 %v131_v31 }
  0x2d   :  { %117 = vmatpush.msra.mxu0 %v82_v27  ;;  %280 = vmatpush.msra.mxu2 %v82_v27 }
  0x2e   :  { %118 = vmatmul.f32.vlgmr.msra.gmra.mxu0 %v80_v28  ;;  %121 = vmatmul.f32.vlgmr.msra.gmra.mxu2 %v81_v29 }
  0x2f   :  { %159 = vmatpush.msra.mxu1 %v130_v32  ;;  %295 = vmatpush.msra.mxu3 %v130_v32 }
  0x31   :  { %160 = vmatpush.msra.mxu1 %v129_v33  ;;  %296 = vmatpush.msra.mxu3 %v129_v33 }
  0xab   :  { %v119_v35 = vpop.f32.mrf.mxu0 }
  0xac   :  { %v120_v36 = vadd.f32 %v303_v34, %v119_v35 }
  0xae   :  { %v125_v37 = vmax.f32 %v120_v36, 0.0 }
  0xb0   :  { %161 = vmatmul.f32.vlgmr.msra.gmra.mxu1 %v125_v37 }
  0xb1   :  { %v122_v38 = vpop.f32.mrf.mxu2 }
  0xb2   :  { %v123_v39 = vadd.f32 %v303_v34, %v122_v38 }
  0xb4   :  { %v126_v40 = vmax.f32 %v123_v39, 0.0 }
  0xb6   :  { %164 = vmatmul.f32.vlgmr.msra.gmra.mxu3 %v126_v40 }
 0x12d   :  { %v162_v42 = vpop.f32.mrf.mxu1 }
 0x12e   :  { %v181_v43 = vadd.f32 %v304_v41, %v162_v42 }
 0x130   :  { %v183_v44 = vadd.f32 %v181_v43, %v80_v28 }
 0x132   :  { %185 = vadd.xlane.f32.xlu0 %v183_v44 }
 0x139   :  { %v165_v45 = vpop.f32.mrf.mxu3 }
 0x13a   :  { %v182_v46 = vadd.f32 %v304_v41, %v165_v45 }
 0x13c   :  { %v184_v47 = vadd.f32 %v182_v46, %v81_v29 }
 0x13e   :  { %187 = vadd.xlane.f32.xlu0 %v184_v47 }
 0x1a5   :  { %v186_v48 = vpop.xlane.xlu0 %185 }
 0x1a6   :  { %v189_v49 = vmul.f32 0.03125, %v186_v48 }
 0x1a8   :  { %v191_v50 = vsub.f32 %v183_v44, %v189_v49  ;;  %v199_v56 = vmul.f32 96.0, %v189_v49 }
 0x1aa   :  { %v193_v51 = vmul.f32 %v191_v50, %v191_v50  ;;  %v201_v57 = vmul.f32 %v199_v56, %v189_v49 }
 0x1ac   :  { %195 = vadd.xlane.f32.xlu1 %v193_v51 }
 0x1b1   :  { %v188_v52 = vpop.xlane.xlu0 %187 }
 0x1b2   :  { %v190_v53 = vmul.f32 0.03125, %v188_v52 }
 0x1b4   :  { %v192_v54 = vsub.f32 %v184_v47, %v190_v53  ;;  %v200_v62 = vmul.f32 96.0, %v190_v53 }
 0x1b6   :  { %v194_v55 = vmul.f32 %v192_v54, %v192_v54  ;;  %v202_v63 = vmul.f32 %v200_v62, %v190_v53 }
 0x1b8   :  { %197 = vadd.xlane.f32.xlu1 %v194_v55 }
 0x21f   :  { %v196_v58 = vpop.xlane.xlu1 %195 }
 0x220   :  { %v203_v59 = vsub.f32 %v196_v58, %v201_v57 }
 0x222   :  { %v205_v60 = vmul.f32 0.03125, %v203_v59 }
 0x224   :  { %v207_v61 = vadd.f32 1e-05, %v205_v60 }
 0x226   :  { %307 = vrsqrt.f32 %v207_v61  ;;  %vm215_vm1 = vweird.f32 %v207_v61 }
 0x22b   :  { %v198_v0 = vpop.xlane.xlu1 %197 }
 0x22c   :  { %v308_v1 = vpop.eup %307  ;;  %v204_v2 = vsub.f32 %v198_v0, %v202_v63 }
 0x22d   :  { %v210_v3 = vmul.f32 %v308_v1, %v207_v61  ;;  %vm216_vm0 = vweird.f32 %v308_v1 }
 0x22e   :  { %v206_v4 = vmul.f32 0.03125, %v204_v2  ;;  %vm217_vm2 = vmor %vm215_vm1, %vm216_vm0 }
 0x22f   :  { %v211_v5 = vmul.f32 %v308_v1, %v210_v3 }
 0x230   :  { %v208_v6 = vadd.f32 1e-05, %v206_v4 }
 0x231   :  { %v212_v7 = vmul.f32 0.5, %v211_v5 }
 0x232   :  { %309 = vrsqrt.f32 %v208_v6  ;;  %vm225_vm4 = vweird.f32 %v208_v6 }
 0x233   :  { %v213_v8 = vsub.f32 1.5, %v212_v7 }
 0x235   :  { %v214_v9 = vmul.f32 %v308_v1, %v213_v8 }
 0x237   :  { %v218_v11 = vsel %vm217_vm2, %v308_v1, %v214_v9 }
 0x238   :  { %v310_v12 = vpop.eup %309  ;;  %v229_v13 = vmul.f32 %v218_v11, %v191_v50 }
 0x239   :  { %v220_v15 = vmul.f32 %v310_v12, %v208_v6  ;;  %vm226_vm3 = vweird.f32 %v310_v12 }
 0x23a   :  { %v235_v16 = vmul.f32 %v305_v10, %v229_v13  ;;  %vm227_vm5 = vmor %vm225_vm4, %vm226_vm3 }
 0x23b   :  { %v221_v17 = vmul.f32 %v310_v12, %v220_v15 }
 0x23c   :  { %v241_v18 = vadd.f32 %v306_v14, %v235_v16 }
 0x23d   :  { %v222_v19 = vmul.f32 0.5, %v221_v17 }
 0x23e   :  { %243 = vst [vmem:[#allocation9] sm:$0xff] %v241_v18 }
 0x23f   :  { %v223_v20 = vsub.f32 1.5, %v222_v19 }
 0x241   :  { %v224_v21 = vmul.f32 %v310_v12, %v223_v20 }
 0x243   :  { %v228_v22 = vsel %vm227_vm5, %v310_v12, %v224_v21 }
 0x244   :  { %v230_v23 = vmul.f32 %v228_v22, %v192_v54 }
 0x246   :  { %v236_v24 = vmul.f32 %v305_v10, %v230_v23 }
 0x248   :  { %v242_v25 = vadd.f32 %v306_v14, %v236_v24 }
 0x24a   :  { %244 = vst [vmem:[#allocation9 + $0x8] sm:$0xff] %v242_v25 }
 0x24b   :  { %257 = dma.vmem_to_hbm [thread:$0]  %s250_s21, 256, %s252_s24, [#allocation5], %s414_s9, %s414_s9, %s415_s10  }
 0x24c   :  { %411 = dma.done.wait [#allocation5], 256  }
 0x24d   :  { %412 = vsyncadd [#allocation5], 4294967040 }
 0x24e   :  { %262 = vsyncpa [#allocation4], 1 }
 0x24f   :  { %263 = vsyncpa [#allocation7], 1 }
 0x250   :  { %264 = vsyncpa [#allocation5], 1 }

</bundles_post_ra>
